<compile_context>
chip_gen: v6e
topology: v6e:2x2x1
jax: 0.10.0
libtpu: 0.0.40
codegen_flags: <defaults>
</compile_context>

<pallas_src>
from functools import partial

import jax
import jax.numpy as jnp
from jax.experimental import pallas as pl
from jax.experimental.pallas import tpu as pltpu

LANE = 128
SUBLANE = 8


def _round_up(v, m):
    return (v + m - 1) // m * m


def _fused_mlp_kernel(x_ref, w_ref, aff_ref, o_ref, *, num_layers):
    # x_ref:   (TN, C_MAX)        bf16 activations (zero-padded lanes)
    # w_ref:   (L, C_MAX, C_MAX)  bf16 stacked weights (in x out, zero-padded)
    # aff_ref: (L, 2, C_MAX)      f32  [scale; shift] folded BN affine
    # o_ref:   (TN, C_MAX)        f32  output (padded lanes are 0)
    h = x_ref[...]                                  # bf16
    act = None
    for l in range(num_layers):                     # static unroll
        y = jnp.dot(h, w_ref[l], preferred_element_type=jnp.float32)
        aff = aff_ref[l]                            # (2, C_MAX) f32
        y = y * aff[0:1, :] + aff[1:2, :]           # fused BN affine (f32)
        act = jnp.maximum(y, 0.0)                   # ReLU in f32
        h = act.astype(jnp.bfloat16)                # bf16 feed for next MXU pass
        # Dropout(p=0.08) is identity in eval mode.
    o_ref[...] = act.astype(o_ref.dtype)


def pack_mlp_decoder_params(params, eps=1e-5):
    """Fold BN into (scale, shift), pad every layer to C_MAX lanes, stack."""
    dims = [params[0]["w"].shape[0]] + [p["w"].shape[1] for p in params]
    c_max = _round_up(max(dims), LANE)
    num_layers = len(params)

    w_all = jnp.zeros((num_layers, c_max, c_max), jnp.float32)
    aff_all = jnp.zeros((num_layers, 2, c_max), jnp.float32)
    for l, p in enumerate(params):
        k, m = p["w"].shape
        scale = p["gamma"] / jnp.sqrt(p["var"] + eps)            # (m,)
        shift = (p["b"] - p["mean"]) * scale + p["beta"]         # (m,)
        w_all = w_all.at[l, :k, :m].set(p["w"].astype(jnp.float32))
        aff_all = aff_all.at[l, 0, :m].set(scale.astype(jnp.float32))
        aff_all = aff_all.at[l, 1, :m].set(shift.astype(jnp.float32))

    return dict(
        w=w_all.astype(jnp.bfloat16),   # bf16 MXU operands
        aff=aff_all,                    # keep folded affine in f32
        c_max=c_max,
        num_layers=num_layers,
        in_channel=dims[0],
        out_channel=dims[-1],
    )


def mlp_decoder_forward(x, packed):
    """Fused eval-mode forward: one pallas_call for the whole MLP stack."""
    n, k = x.shape
    assert k == packed["in_channel"]
    c_max = packed["c_max"]
    num_layers = packed["num_layers"]

    # Batch tile: lane-dense features, sublane-aligned batch. For non-toy N
    # this gives a real pipeline over batch tiles; tiny N stays a single tile.
    tn = min(128, _round_up(n, SUBLANE))
    n_pad = _round_up(n, tn)

    # Zero-pad activations to (n_pad, c_max); padded rows/lanes are inert.
    x_p = jnp.zeros((n_pad, c_max), jnp.bfloat16)
    x_p = x_p.at[:n, :k].set(x.astype(jnp.bfloat16))

    grid = (pl.cdiv(n_pad, tn),)
    out = pl.pallas_call(
        partial(_fused_mlp_kernel, num_layers=num_layers),
        out_shape=jax.ShapeDtypeStruct((n_pad, c_max), jnp.float32),
        grid=grid,
        in_specs=[
            pl.BlockSpec((tn, c_max), lambda i: (i, 0),
                         memory_space=pltpu.MemorySpace.VMEM),
            pl.BlockSpec((num_layers, c_max, c_max), lambda i: (0, 0, 0),
                         memory_space=pltpu.MemorySpace.VMEM),
            pl.BlockSpec((num_layers, 2, c_max), lambda i: (0, 0, 0),
                         memory_space=pltpu.MemorySpace.VMEM),
        ],
        out_specs=pl.BlockSpec((tn, c_max), lambda i: (i, 0),
                               memory_space=pltpu.MemorySpace.VMEM),
        compiler_params=pltpu.CompilerParams(
            dimension_semantics=("parallel",),
        ),
    )(x_p, packed["w"], packed["aff"])

    return out[:n, :packed["out_channel"]].astype(x.dtype)


def init_mlp_decoder_params(key, in_channel, mlp, dtype=jnp.float32):
    """Deterministic synthetic parameters matching the PyTorch module's shapes."""
    params = []
    last = in_channel
    for out_channel in mlp:
        key, kw, kb, kg, kbeta, km, kv = jax.random.split(key, 7)
        bound = 1.0 / jnp.sqrt(jnp.asarray(last, dtype))
        w = jax.random.uniform(kw, (last, out_channel), dtype, -bound, bound)  # (in,out)
        b = jax.random.uniform(kb, (out_channel,), dtype, -bound, bound)
        gamma = 1.0 + 0.1 * jax.random.normal(kg, (out_channel,), dtype)
        beta = 0.1 * jax.random.normal(kbeta, (out_channel,), dtype)
        running_mean = 0.1 * jax.random.normal(km, (out_channel,), dtype)
        running_var = jnp.abs(1.0 + 0.1 * jax.random.normal(kv, (out_channel,), dtype))
        params.append(dict(w=w, b=b, gamma=gamma, beta=beta,
                           mean=running_mean, var=running_var))
        last = out_channel
    return params


def mlp_decoder_reference(x, params, eps=1e-5):
    """Pure-JAX f32 reference (original module eval-mode semantics)."""
    for p in params:
        y = x @ p["w"] + p["b"]
        y = (y - p["mean"]) / jnp.sqrt(p["var"] + eps) * p["gamma"] + p["beta"]
        x = jnp.maximum(y, 0.0)
    return x


if __name__ == "__main__":
    key = jax.random.PRNGKey(0)
    k_x, k_p = jax.random.split(key)

    batch = 8
    in_channel = 16
    mlp = [32, 64, 8]

    x = jax.random.normal(k_x, (batch, in_channel), jnp.float32)
    params = init_mlp_decoder_params(k_p, in_channel, mlp)
    packed = pack_mlp_decoder_params(params)

    out = mlp_decoder_forward(x, packed)
    out = jax.block_until_ready(out)

    ref = mlp_decoder_reference(x, params)
    assert out.shape == (batch, mlp[-1])
    # bf16 MXU operands (f32 accumulation) => loosened tolerance vs f32 reference.
    assert jnp.allclose(out, ref, atol=5e-2, rtol=5e-2), "mismatch vs reference"

    print("KERNEL_OK")
</pallas_src>

<mosaic_0001>
module attributes {stable_mosaic.version = 11 : i64} {
  func.func @_fused_mlp_kernel(%arg0: i32, %arg1: memref<8x128xbf16, #tpu.memory_space<vmem>>, %arg2: memref<3x128x128xbf16, #tpu.memory_space<vmem>>, %arg3: memref<3x2x128xf32, #tpu.memory_space<vmem>>, %arg4: memref<8x128xf32, #tpu.memory_space<vmem>>) attributes {dimension_semantics = [#tpu.dimension_semantics<parallel>], iteration_bounds = array<i64: 1>, scalar_prefetch = 0 : i64, scratch_operands = 0 : i64, tpu.core_type = #tpu.core_type<tc>, window_params = [{transform_indices = @transform_0, window_bounds = array<i64: 8, 128>}, {pipeline_mode = #tpu.pipeline_mode<synchronous>, transform_indices = @transform_1, window_bounds = array<i64: 3, 128, 128>}, {pipeline_mode = #tpu.pipeline_mode<synchronous>, transform_indices = @transform_2, window_bounds = array<i64: 3, 2, 128>}, {transform_indices = @transform_3, window_bounds = array<i64: 8, 128>}]} {
    %c0 = arith.constant 0 : index
    %c0_0 = arith.constant 0 : index
    %0 = vector.load %arg1[%c0, %c0_0] : memref<8x128xbf16, #tpu.memory_space<vmem>>, vector<8x128xbf16>
    %c0_1 = arith.constant 0 : index
    %c0_2 = arith.constant 0 : index
    %c0_3 = arith.constant 0 : index
    %1 = vector.load %arg2[%c0_1, %c0_2, %c0_3] : memref<3x128x128xbf16, #tpu.memory_space<vmem>>, vector<1x128x128xbf16>
    %2 = vector.shape_cast %1 : vector<1x128x128xbf16> to vector<128x128xbf16>
    %cst = arith.constant dense<0.000000e+00> : vector<8x128xf32>
    %3 = tpu.matmul %0, %2, %cst {dimension_numbers = #tpu.dot_dimension_numbers<[1], [0], [0], [1], [0, 0, 1, 1], [], []>} : vector<8x128xbf16>, vector<128x128xbf16>, vector<8x128xf32> -> vector<8x128xf32>
    %c0_4 = arith.constant 0 : index
    %c0_5 = arith.constant 0 : index
    %c0_6 = arith.constant 0 : index
    %4 = vector.load %arg3[%c0_4, %c0_5, %c0_6] : memref<3x2x128xf32, #tpu.memory_space<vmem>>, vector<1x2x128xf32>
    %5 = vector.shape_cast %4 : vector<1x2x128xf32> to vector<2x128xf32>
    %6 = vector.extract_strided_slice %5 {offsets = [0, 0], sizes = [1, 128], strides = [1, 1]} : vector<2x128xf32> to vector<1x128xf32>
    %7 = vector.broadcast %6 : vector<1x128xf32> to vector<8x128xf32>
    %8 = arith.mulf %3, %7 : vector<8x128xf32>
    %9 = vector.extract_strided_slice %5 {offsets = [1, 0], sizes = [1, 128], strides = [1, 1]} : vector<2x128xf32> to vector<1x128xf32>
    %10 = vector.broadcast %9 : vector<1x128xf32> to vector<8x128xf32>
    %11 = arith.addf %8, %10 : vector<8x128xf32>
    %cst_7 = arith.constant 0.000000e+00 : f32
    %12 = vector.broadcast %cst_7 : f32 to vector<8x128xf32>
    %13 = arith.maximumf %11, %12 : vector<8x128xf32>
    %14 = arith.truncf %13 : vector<8x128xf32> to vector<8x128xbf16>
    %c1 = arith.constant 1 : index
    %c0_8 = arith.constant 0 : index
    %c0_9 = arith.constant 0 : index
    %15 = vector.load %arg2[%c1, %c0_8, %c0_9] : memref<3x128x128xbf16, #tpu.memory_space<vmem>>, vector<1x128x128xbf16>
    %16 = vector.shape_cast %15 : vector<1x128x128xbf16> to vector<128x128xbf16>
    %cst_10 = arith.constant dense<0.000000e+00> : vector<8x128xf32>
    %17 = tpu.matmul %14, %16, %cst_10 {dimension_numbers = #tpu.dot_dimension_numbers<[1], [0], [0], [1], [0, 0, 1, 1], [], []>} : vector<8x128xbf16>, vector<128x128xbf16>, vector<8x128xf32> -> vector<8x128xf32>
    %c1_11 = arith.constant 1 : index
    %c0_12 = arith.constant 0 : index
    %c0_13 = arith.constant 0 : index
    %18 = vector.load %arg3[%c1_11, %c0_12, %c0_13] : memref<3x2x128xf32, #tpu.memory_space<vmem>>, vector<1x2x128xf32>
    %19 = vector.shape_cast %18 : vector<1x2x128xf32> to vector<2x128xf32>
    %20 = vector.extract_strided_slice %19 {offsets = [0, 0], sizes = [1, 128], strides = [1, 1]} : vector<2x128xf32> to vector<1x128xf32>
    %21 = vector.broadcast %20 : vector<1x128xf32> to vector<8x128xf32>
    %22 = arith.mulf %17, %21 : vector<8x128xf32>
    %23 = vector.extract_strided_slice %19 {offsets = [1, 0], sizes = [1, 128], strides = [1, 1]} : vector<2x128xf32> to vector<1x128xf32>
    %24 = vector.broadcast %23 : vector<1x128xf32> to vector<8x128xf32>
    %25 = arith.addf %22, %24 : vector<8x128xf32>
    %cst_14 = arith.constant 0.000000e+00 : f32
    %26 = vector.broadcast %cst_14 : f32 to vector<8x128xf32>
    %27 = arith.maximumf %25, %26 : vector<8x128xf32>
    %28 = arith.truncf %27 : vector<8x128xf32> to vector<8x128xbf16>
    %c2 = arith.constant 2 : index
    %c0_15 = arith.constant 0 : index
    %c0_16 = arith.constant 0 : index
    %29 = vector.load %arg2[%c2, %c0_15, %c0_16] : memref<3x128x128xbf16, #tpu.memory_space<vmem>>, vector<1x128x128xbf16>
    %30 = vector.shape_cast %29 : vector<1x128x128xbf16> to vector<128x128xbf16>
    %cst_17 = arith.constant dense<0.000000e+00> : vector<8x128xf32>
    %31 = tpu.matmul %28, %30, %cst_17 {dimension_numbers = #tpu.dot_dimension_numbers<[1], [0], [0], [1], [0, 0, 1, 1], [], []>} : vector<8x128xbf16>, vector<128x128xbf16>, vector<8x128xf32> -> vector<8x128xf32>
    %c2_18 = arith.constant 2 : index
    %c0_19 = arith.constant 0 : index
    %c0_20 = arith.constant 0 : index
    %32 = vector.load %arg3[%c2_18, %c0_19, %c0_20] : memref<3x2x128xf32, #tpu.memory_space<vmem>>, vector<1x2x128xf32>
    %33 = vector.shape_cast %32 : vector<1x2x128xf32> to vector<2x128xf32>
    %34 = vector.extract_strided_slice %33 {offsets = [0, 0], sizes = [1, 128], strides = [1, 1]} : vector<2x128xf32> to vector<1x128xf32>
    %35 = vector.broadcast %34 : vector<1x128xf32> to vector<8x128xf32>
    %36 = arith.mulf %31, %35 : vector<8x128xf32>
    %37 = vector.extract_strided_slice %33 {offsets = [1, 0], sizes = [1, 128], strides = [1, 1]} : vector<2x128xf32> to vector<1x128xf32>
    %38 = vector.broadcast %37 : vector<1x128xf32> to vector<8x128xf32>
    %39 = arith.addf %36, %38 : vector<8x128xf32>
    %cst_21 = arith.constant 0.000000e+00 : f32
    %40 = vector.broadcast %cst_21 : f32 to vector<8x128xf32>
    %41 = arith.maximumf %39, %40 : vector<8x128xf32>
    %c0_22 = arith.constant 0 : index
    %c0_23 = arith.constant 0 : index
    %42 = vector.load %arg4[%c0_22, %c0_23] : memref<8x128xf32, #tpu.memory_space<vmem>>, vector<8x128xf32>
    tpu.vector_store %arg4[%c0_22, %c0_23], %41 {strides = array<i32>} : memref<8x128xf32, #tpu.memory_space<vmem>>, vector<8x128xf32>,
    return
  }
  func.func @transform_0(%arg0: i32) -> (i32, i32) {
    %c0_i32 = arith.constant 0 : i32
    %c0_i32_0 = arith.constant 0 : i32
    return %arg0, %c0_i32 : i32, i32
  }
  func.func @transform_1(%arg0: i32) -> (i32, i32, i32) {
    %c0_i32 = arith.constant 0 : i32
    %c0_i32_0 = arith.constant 0 : i32
    %c0_i32_1 = arith.constant 0 : i32
    %c0_i32_2 = arith.constant 0 : i32
    return %c0_i32, %c0_i32_0, %c0_i32_1 : i32, i32, i32
  }
  func.func @transform_2(%arg0: i32) -> (i32, i32, i32) {
    %c0_i32 = arith.constant 0 : i32
    %c0_i32_0 = arith.constant 0 : i32
    %c0_i32_1 = arith.constant 0 : i32
    %c0_i32_2 = arith.constant 0 : i32
    return %c0_i32, %c0_i32_0, %c0_i32_1 : i32, i32, i32
  }
  func.func @transform_3(%arg0: i32) -> (i32, i32) {
    %c0_i32 = arith.constant 0 : i32
    %c0_i32_0 = arith.constant 0 : i32
    return %arg0, %c0_i32 : i32, i32
  }
}

</mosaic_0001>

<bundles_post_ra>
// kernel: tpu_custom_call.1
= control target key start
LH: loop header
LB: loop body
LE: loop exit
PB: predicated region body
PF: predicated region fallthrough
CT: control target
= control target key end

     0   :  { %8 = vsyncpa [#allocation3], 0  ;;  %s730_s0 = inlined_call_operand.hbm [shape: bf16[8,128], index: 0, kind: input, shape index: {}]   ;;  %s731_s1 = inlined_call_operand.hbm [shape: bf16[3,128,128], index: 1, kind: input, shape index: {}]   ;;  %s732_s2 = inlined_call_operand.hbm [shape: f32[3,2,128], index: 2, kind: input, shape index: {}]   ;;  %s733_s3 = inlined_call_operand.hbm [shape: f32[8,128], index: 3, kind: output, shape index: {}]  }
   0x1   :  { %9 = vsyncpa [#allocation6], 0 }
   0x2   :  { %10 = vsyncpa [#allocation4], 0  ;;  %s658_s12 = smov [#allocation5]  }
   0x3   :  { %s26_s13 = sshll.u32 %s658_s12, 4  ;;  %s27_s13 = int_to_ptr.vmem [resolvable:$true] %s26_s13 }
   0x4   :  { %s580_s14 = scalar_lea.vmem %s27_s13, 3072  ;;  %p585_p1 = scmp.lt.s32.totalorder %s27_s13, %s27_s13 }
   0x5   :  { %p581_p0 = scmp.ne.s32.totalorder %s27_s13, %s580_s14  ;;  %p586_p2 = scmp.lt.s32.totalorder %s580_s14, %s580_s14 }
   0x7   :  { %p587_p3 = por %p586_p2, %p585_p1 }
   0x9   :  { %p588_p4 = pnand %p587_p3, %p581_p0 }
   0xb   :  { %591 = shalt.err (!%p588_p4)
}
   0xc   :  { %s659_s15 = smov 64   ;;  %s660_s16 = smov 4  }
   0xd   :  { %32 = dma.hbm_to_vmem [thread:$0]  %s731_s1, 3072, %s27_s13, [#allocation6], %s659_s15, %s659_s15, %s660_s16  }
   0xe   :  { %s661_s19 = smov [#allocation2]   ;;  %s662_s21 = smov [#allocation7]  }
   0xf   :  { %s17_s20 = sshll.u32 %s661_s19, 4  ;;  %s38_s22 = sshll.u32 %s662_s21, 4  ;;  %s18_s20 = int_to_ptr.vmem [resolvable:$true] %s17_s20  ;;  %s39_s22 = int_to_ptr.vmem [resolvable:$true] %s38_s22 }
  0x10   :  { %s600_s23 = scalar_lea.vmem %s18_s20, 64  ;;  %p605_p6 = scmp.lt.s32.totalorder %s18_s20, %s18_s20 }
  0x11   :  { %p601_p5 = scmp.ne.s32.totalorder %s18_s20, %s600_s23  ;;  %p606_p7 = scmp.lt.s32.totalorder %s600_s23, %s600_s23 }
  0x13   :  { %p607_p8 = por %p606_p7, %p605_p6 }
  0x15   :  { %p608_p9 = pnand %p607_p8, %p601_p5 }
  0x17   :  { %611 = shalt.err (!%p608_p9)
}
  0x18   :  { %20 = dma.hbm_to_vmem [thread:$0]  %s730_s0, 64, %s18_s20, [#allocation3]  }
  0x19   :  { %s620_s26 = scalar_lea.vmem %s39_s22, 96  ;;  %p625_p11 = scmp.lt.s32.totalorder %s39_s22, %s39_s22 }
  0x1a   :  { %p621_p10 = scmp.ne.s32.totalorder %s39_s22, %s620_s26  ;;  %p626_p12 = scmp.lt.s32.totalorder %s620_s26, %s620_s26 }
  0x1c   :  { %p627_p13 = por %p626_p12, %p625_p11 }
  0x1e   :  { %p628_p0 = pnand %p627_p13, %p621_p10 }
  0x20   :  { %631 = shalt.err (!%p628_p0)
}
  0x21   :  { %s663_s1 = smov 32   ;;  %s664_s27 = smov 2  }
  0x22   :  { %44 = dma.hbm_to_vmem [thread:$0]  %s732_s2, 96, %s39_s22, [#allocation6], %s663_s1, %s663_s1, %s664_s27  }
  0x23   :  { %652 = dma.done.wait [#allocation3], 64  }
  0x24   :  { %653 = vsyncadd [#allocation3], 4294967232 }
  0x25   :  { %654 = dma.done.wait [#allocation6], 3168  }
  0x26   :  { %655 = vsyncadd [#allocation6], 4294964128  ;;  %v665_v0 = vmov 0.0   ;;  %vm666_vm0 = vmmov 0   ;;  %v548_v1 = vld [vmem:[#allocation5 + $0x38] sm:$0xff]   ;;  %v549_v2 = vld [vmem:[#allocation5 + $0x30] sm:$0xff]   ;;  %v161_v24 = vlaneseq }
  0x27   :  { %478 = vmatprep.subr.bf16.mxu0 %v665_v0  ;;  %494 = vmatprep.mubr.msk.bf16.mxu0 %vm666_vm0, %v665_v0  ;;  %v550_v3 = vld [vmem:[#allocation5 + $0x28] sm:$0xff]   ;;  %v556_v4 = vld [vmem:[#allocation5 + $0x78] sm:$0xff]   ;;  %v551_v5 = vld [vmem:[#allocation5 + $0x20] sm:$0xff]   ;;  %s667_s0 = smov [#allocation8]  }
  0x28   :  { %498 = vmatprep.subr.bf16.mxu1 %v665_v0  ;;  %514 = vmatprep.mubr.msk.bf16.mxu1 %vm666_vm0, %v665_v0  ;;  %v557_v6 = vld [vmem:[#allocation5 + $0x70] sm:$0xff]   ;;  %v552_v7 = vld [vmem:[#allocation5 + $0x18] sm:$0xff]   ;;  %v558_v8 = vld [vmem:[#allocation5 + $0x68] sm:$0xff]   ;;  %v162_v25 = vshrl.u32 %v161_v24, 7  ;;  %s417_s2 = sshll.u32 %s667_s0, 4  ;;  %s418_s2 = int_to_ptr.vmem [resolvable:$true] %s417_s2 }
  0x29   :  { %479 = vmatpush3.bf16.msra.mxu0 %v548_v1  ;;  %499 = vmatpush3.bf16.msra.mxu1 %v556_v4  ;;  %v553_v9 = vld [vmem:[#allocation5 + $0x10] sm:$0xff]   ;;  %v559_v10 = vld [vmem:[#allocation5 + $0x60] sm:$0xff]   ;;  %v554_v11 = vld [vmem:[#allocation5 + $0x8] sm:$0xff]   ;;  %s632_s30 = scalar_lea.vmem %s418_s2, 128  ;;  %p637_p2 = scmp.lt.s32.totalorder %s418_s2, %s418_s2 }
  0x2a   :  { %480 = vmatprep.subr.bf16.mxu0 %v665_v0  ;;  %500 = vmatprep.subr.bf16.mxu1 %v665_v0  ;;  %v560_v12 = vld [vmem:[#allocation5 + $0x58] sm:$0xff]   ;;  %v555_v13 = vld [vmem:[#allocation5] sm:$0xff]   ;;  %v561_v14 = vld [vmem:[#allocation5 + $0x50] sm:$0xff]   ;;  %v163_v26 = vsub.s32 0, %v162_v25  ;;  %v168_v28 = vsub.s32 1, %v162_v25  ;;  %p633_p1 = scmp.ne.s32.totalorder %s418_s2, %s632_s30  ;;  %p638_p3 = scmp.lt.s32.totalorder %s632_s30, %s632_s30 }
  0x2b   :  { %v55_v15 = vld [vmem:[#allocation2] sm:$0xf]  ;;  %v562_v16 = vld [vmem:[#allocation5 + $0x48] sm:$0xff]   ;;  %v563_v17 = vld [vmem:[#allocation5 + $0x40] sm:$0xff]  }
  0x2c   :  { %v564_v18 = vld [vmem:[#allocation5 + $0xb8] sm:$0xff]   ;;  %v565_v19 = vld [vmem:[#allocation5 + $0xb0] sm:$0xff]   ;;  %v566_v20 = vld [vmem:[#allocation5 + $0xa8] sm:$0xff]   ;;  %p639_p4 = por %p638_p3, %p637_p2 }
  0x2d   :  { %481 = vmatpush3.bf16.msra.mxu0 %v549_v2  ;;  %501 = vmatpush3.bf16.msra.mxu1 %v557_v6  ;;  %v567_v21 = vld [vmem:[#allocation5 + $0xa0] sm:$0xff]   ;;  %v568_v22 = vld [vmem:[#allocation5 + $0x98] sm:$0xff]   ;;  %v569_v23 = vld [vmem:[#allocation5 + $0x90] sm:$0xff]  }
  0x2e   :  { %482 = vmatprep.subr.bf16.mxu0 %v665_v0  ;;  %502 = vmatprep.subr.bf16.mxu1 %v665_v0  ;;  %v160_v27 = vld [vmem:[#allocation7] sm:$0x3]  ;;  %v570_v39 = vld [vmem:[#allocation5 + $0x88] sm:$0xff]   ;;  %v279_v41 = vld [vmem:[#allocation7 + $0x2] sm:$0x3]  ;;  %p640_p5 = pnand %p639_p4, %p633_p1 }
  0x2f   :  { %v164_v29 = vrot.slane %v160_v27, %v163_v26  ;;  %v169_v30 = vrot.slane %v160_v27, %v168_v28  ;;  %v571_v40 = vld [vmem:[#allocation5 + $0x80] sm:$0xff]   ;;  %v283_v42 = vrot.slane %v279_v41, %v163_v26  ;;  %v288_v43 = vrot.slane %v279_v41, %v168_v28 }
  0x30   :  { %v398_v52 = vld [vmem:[#allocation7 + $0x4] sm:$0x3] }
  0x31   :  { %483 = vmatpush3.bf16.msra.mxu0 %v550_v3  ;;  %503 = vmatpush3.bf16.msra.mxu1 %v558_v8  ;;  %v402_v53 = vrot.slane %v398_v52, %v163_v26  ;;  %v407_v54 = vrot.slane %v398_v52, %v168_v28 }
  0x32   :  { %484 = vmatprep.subr.bf16.mxu0 %v665_v0  ;;  %504 = vmatprep.subr.bf16.mxu1 %v665_v0 }
  0x35   :  { %485 = vmatpush3.bf16.msra.mxu0 %v551_v5  ;;  %505 = vmatpush3.bf16.msra.mxu1 %v559_v10 }
  0x36   :  { %486 = vmatprep.subr.bf16.mxu0 %v665_v0  ;;  %506 = vmatprep.subr.bf16.mxu1 %v665_v0 }
  0x39   :  { %487 = vmatpush3.bf16.msra.mxu0 %v552_v7  ;;  %507 = vmatpush3.bf16.msra.mxu1 %v560_v12 }
  0x3a   :  { %488 = vmatprep.subr.bf16.mxu0 %v665_v0  ;;  %508 = vmatprep.subr.bf16.mxu1 %v665_v0 }
  0x3d   :  { %489 = vmatpush3.bf16.msra.mxu0 %v553_v9  ;;  %509 = vmatpush3.bf16.msra.mxu1 %v561_v14 }
  0x3e   :  { %490 = vmatprep.subr.bf16.mxu0 %v665_v0  ;;  %510 = vmatprep.subr.bf16.mxu1 %v665_v0 }
  0x41   :  { %491 = vmatpush3.bf16.msra.mxu0 %v554_v11  ;;  %511 = vmatpush3.bf16.msra.mxu1 %v562_v16 }
  0x42   :  { %492 = vmatprep.subr.bf16.mxu0 %v665_v0  ;;  %512 = vmatprep.subr.bf16.mxu1 %v665_v0 }
  0x45   :  { %493 = vmatpush3.bf16.msra.mxu0 %v555_v13  ;;  %513 = vmatpush3.bf16.msra.mxu1 %v563_v17 }
  0x46   :  { %518 = vmatprep.subr.bf16.mxu0 %v665_v0 }
  0x48   :  { %495 = vmatmul.mubr.bf16.vlgmr.msra.gmra.mxu0 %v55_v15 }
  0x49   :  { %534 = vmatprep.mubr.msk.bf16.mxu0 %vm666_vm0, %v665_v0  ;;  %519 = vmatpush3.bf16.msra.mxu0 %v564_v18 }
  0x4a   :  { %520 = vmatprep.subr.bf16.mxu0 %v665_v0 }
  0x4d   :  { %521 = vmatpush3.bf16.msra.mxu0 %v565_v19 }
  0x4e   :  { %522 = vmatprep.subr.bf16.mxu0 %v665_v0 }
  0x51   :  { %523 = vmatpush3.bf16.msra.mxu0 %v566_v20 }
  0x52   :  { %524 = vmatprep.subr.bf16.mxu0 %v665_v0 }
  0x55   :  { %525 = vmatpush3.bf16.msra.mxu0 %v567_v21 }
  0x56   :  { %526 = vmatprep.subr.bf16.mxu0 %v665_v0 }
  0x59   :  { %527 = vmatpush3.bf16.msra.mxu0 %v568_v22 }
  0x5a   :  { %528 = vmatprep.subr.bf16.mxu0 %v665_v0 }
  0x5d   :  { %529 = vmatpush3.bf16.msra.mxu0 %v569_v23 }
  0x5e   :  { %530 = vmatprep.subr.bf16.mxu0 %v665_v0 }
  0x61   :  { %531 = vmatpush3.bf16.msra.mxu0 %v570_v39 }
  0x62   :  { %532 = vmatprep.subr.bf16.mxu0 %v665_v0 }
  0x65   :  { %533 = vmatpush3.bf16.msra.mxu0 %v571_v40 }
 0x108   :  { %v154_v31 = vpop.f32.mrf.mxu0 }
 0x109   :  { %v165_v32 = vmul.f32 %v164_v29, %v154_v31 }
 0x10a   :  { %v496_v33 = vpop.f32.mrf.mxu0 }
 0x10b   :  { %v170_v34 = vadd.f32 %v169_v30, %v165_v32 }
 0x10c   :  { %v157_v35 = vpop.f32.mrf.mxu0 }
 0x10d   :  { %v171_v36 = vmax.f32 %v170_v34, 0.0 }
 0x10e   :  { %v497_v37 = vpop.f32.mrf.mxu0 }
 0x10f   :  { %v172_v38 = vpack.c.bf16 %v171_v36, %v171_v36 }
 0x111   :  { %515 = vmatmul.mubr.bf16.vlgmr.msra.gmra.mxu1 %v172_v38 }
 0x1d1   :  { %v272_v44 = vpop.f32.mrf.mxu1 }
 0x1d2   :  { %v284_v45 = vmul.f32 %v283_v42, %v272_v44 }
 0x1d3   :  { %v516_v46 = vpop.f32.mrf.mxu1 }
 0x1d4   :  { %v289_v47 = vadd.f32 %v288_v43, %v284_v45 }
 0x1d5   :  { %v275_v48 = vpop.f32.mrf.mxu1 }
 0x1d6   :  { %v290_v49 = vmax.f32 %v289_v47, 0.0 }
 0x1d7   :  { %v517_v50 = vpop.f32.mrf.mxu1 }
 0x1d8   :  { %v291_v51 = vpack.c.bf16 %v290_v49, %v290_v49 }
 0x1da   :  { %535 = vmatmul.mubr.bf16.vlgmr.msra.gmra.mxu0 %v291_v51 }
 0x29a   :  { %v391_v55 = vpop.f32.mrf.mxu0 }
 0x29b   :  { %v403_v56 = vmul.f32 %v402_v53, %v391_v55 }
 0x29c   :  { %v536_v57 = vpop.f32.mrf.mxu0 }
 0x29d   :  { %v408_v58 = vadd.f32 %v407_v54, %v403_v56 }
 0x29e   :  { %v394_v59 = vpop.f32.mrf.mxu0 }
 0x29f   :  { %v409_v60 = vmax.f32 %v408_v58, 0.0 }
 0x2a0   :  { %v537_v61 = vpop.f32.mrf.mxu0 }
 0x2a1   :  { %410 = vst [vmem:[#allocation8] sm:$0xff] %v409_v60 }
 0x2a2   :  { %643 = shalt.err (!%p640_p5)
}
 0x2a3   :  { %420 = dma.vmem_to_hbm [thread:$0]  %s418_s2, 128, %s733_s3, [#allocation4]  }
 0x2a4   :  { %656 = dma.done.wait [#allocation4], 128  }
 0x2a5   :  { %657 = vsyncadd [#allocation4], 4294967168 }
 0x2a6   :  { %424 = vsyncpa [#allocation3], 1 }
 0x2a7   :  { %425 = vsyncpa [#allocation6], 1 }
 0x2a8   :  { %426 = vsyncpa [#allocation4], 1 }

</bundles_post_ra>
